<compile_context>
chip_gen: v7x
topology: tpu7x:2x2x1
jax: 0.10.0
libtpu: 0.0.40
codegen_flags: <defaults>
</compile_context>

<pallas_src>
import jax
import jax.numpy as jnp
from jax import lax
from jax.experimental import pallas as pl
from jax.experimental.pallas import tpu as pltpu


def _make_resblock_kernel(C, H, W):
    """Fused ResBlock kernel operating on one batch element in (C, H*W) layout."""
    HW = H * W
    PAD = W + 1                    # flat row-pad (one zero row + 1 elem) on each side
    XPAD_LEN = HW + 2 * PAD        # padded flat image length

    def kernel(x_ref, w1_ref, b1_ref, w2_ref, b2_ref, o_ref, xpad_ref, pat_ref):
        # Column-validity masks: depend only on the output pixel's x coordinate.
        col = lax.broadcasted_iota(jnp.int32, (1, HW), 1) % W
        col_mask = {0: col >= 1, 1: None, 2: col <= W - 2}

        # Zero the row-padded scratch; only its interior is ever written afterwards,
        # so the zero halo rows stay valid for both conv layers.
        xpad_ref[...] = jnp.zeros_like(xpad_ref)

        def conv3x3(a, w_ref_):
            """a: (C, H*W) activations -> (Cout, H*W) = W_eff @ patch_stack (one MXU matmul)."""
            xpad_ref[:, PAD:PAD + HW] = a
            for t in range(9):
                dy, dx = divmod(t, 3)
                s = (dy - 1) * W + (dx - 1)               # flat shift of this tap
                tap = xpad_ref[:, PAD + s:PAD + s + HW]   # (C, H*W), static slice
                m = col_mask[dx]
                if m is not None:                          # zero horizontally out-of-range taps
                    tap = jnp.where(m, tap, 0.0)
                pat_ref[t * C:(t + 1) * C, :] = tap
            # Single contraction, K = 9*Cin, lane-dense N = H*W.
            return jnp.dot(w_ref_[...], pat_ref[...],
                           preferred_element_type=jnp.float32)

        x = x_ref[0]                                       # (C, H*W)

        # Layer 1: conv3x3 + folded BN + ReLU (intermediate stays on-chip).
        h = jnp.maximum(conv3x3(x, w1_ref) + b1_ref[...], 0.0)

        # Layer 2: conv3x3 + folded BN + residual + ReLU.
        o = conv3x3(h, w2_ref) + b2_ref[...] + x
        o_ref[0] = jnp.maximum(o, 0.0).astype(o_ref.dtype)

    return kernel, XPAD_LEN


def resblock_pallas(x_nchw, params):
    """ResBlock forward. x_nchw: (N, C, H, W) like PyTorch. BN in inference mode."""
    N, C, H, W = x_nchw.shape
    HW = H * W

    def fold(w_oihw, b, gamma, beta, mean, var, eps=1e-5):
        # Fold BN (inference) into the conv: y = (conv(x)+b - mean)/sqrt(var+eps)*gamma + beta
        scale = gamma / jnp.sqrt(var + eps)                # (Cout,)
        shift = beta - mean * scale
        # (Cout, Cin, 3, 3) -> (Cout, kh, kw, Cin) -> (Cout, 9*Cin); BN scale folded per output row.
        w_eff = (jnp.transpose(w_oihw, (0, 2, 3, 1))
                 .reshape(w_oihw.shape[0], -1) * scale[:, None]).astype(jnp.float32)
        b_eff = ((b * scale + shift)[:, None]).astype(jnp.float32)   # (Cout, 1)
        return w_eff, b_eff

    w1_eff, b1_eff = fold(params["w1"], params["b1"], params["gamma1"],
                          params["beta1"], params["mean1"], params["var1"])
    w2_eff, b2_eff = fold(params["w2"], params["b2"], params["gamma2"],
                          params["beta2"], params["mean2"], params["var2"])

    kernel, xpad_len = _make_resblock_kernel(C, H, W)
    x_flat = x_nchw.reshape(N, C, HW)                      # lane-dense (C, H*W) layout, free reshape

    out_flat = pl.pallas_call(
        kernel,
        out_shape=jax.ShapeDtypeStruct((N, C, HW), x_nchw.dtype),
        grid=(N,),
        in_specs=[
            pl.BlockSpec((1, C, HW), lambda n: (n, 0, 0)),     # input, one batch element per step
            pl.BlockSpec((C, 9 * C), lambda n: (0, 0)),        # layer-1 effective weights
            pl.BlockSpec((C, 1), lambda n: (0, 0)),            # layer-1 effective bias
            pl.BlockSpec((C, 9 * C), lambda n: (0, 0)),        # layer-2 effective weights
            pl.BlockSpec((C, 1), lambda n: (0, 0)),            # layer-2 effective bias
        ],
        out_specs=pl.BlockSpec((1, C, HW), lambda n: (n, 0, 0)),
        scratch_shapes=[
            pltpu.VMEM((C, xpad_len), jnp.float32),            # row-padded flat image
            pltpu.VMEM((9 * C, HW), jnp.float32),              # patch stack for the single matmul
        ],
        compiler_params=pltpu.CompilerParams(
            dimension_semantics=("parallel",),
            vmem_limit_bytes=16 * 1024 * 1024,
        ),
    )(x_flat, w1_eff, b1_eff, w2_eff, b2_eff)

    return out_flat.reshape(N, C, H, W)                       # already NCHW-ordered


def resblock_reference(x_nchw, params):
    """Pure-JAX reference (NCHW, matches PyTorch inference-mode semantics)."""
    def conv(x, w, b):
        y = lax.conv_general_dilated(
            x, w, window_strides=(1, 1), padding="SAME",
            dimension_numbers=("NCHW", "OIHW", "NCHW"))
        return y + b[None, :, None, None]

    def bn(x, gamma, beta, mean, var, eps=1e-5):
        return (x - mean[None, :, None, None]) / jnp.sqrt(var[None, :, None, None] + eps) \
            * gamma[None, :, None, None] + beta[None, :, None, None]

    o = conv(x_nchw, params["w1"], params["b1"])
    o = bn(o, params["gamma1"], params["beta1"], params["mean1"], params["var1"])
    o = jnp.maximum(o, 0.0)
    o = conv(o, params["w2"], params["b2"])
    o = bn(o, params["gamma2"], params["beta2"], params["mean2"], params["var2"])
    o = o + x_nchw
    return jnp.maximum(o, 0.0)


if __name__ == "__main__":
    plane, N, H, W = 4, 2, 16, 16

    key = jax.random.PRNGKey(0)
    k = jax.random.split(key, 8)

    x = jax.random.normal(k[0], (N, plane, H, W), jnp.float32)

    arange = jnp.arange(plane, dtype=jnp.float32)
    params = {
        "w1": 0.1 * jax.random.normal(k[1], (plane, plane, 3, 3), jnp.float32),
        "b1": 0.05 * jax.random.normal(k[2], (plane,), jnp.float32),
        "gamma1": 1.0 + 0.1 * arange,
        "beta1": 0.02 * arange - 0.03,
        "mean1": 0.1 * jax.random.normal(k[3], (plane,), jnp.float32),
        "var1": 1.0 + 0.2 * arange,
        "w2": 0.1 * jax.random.normal(k[4], (plane, plane, 3, 3), jnp.float32),
        "b2": 0.05 * jax.random.normal(k[5], (plane,), jnp.float32),
        "gamma2": 1.0 - 0.05 * arange,
        "beta2": 0.01 * arange + 0.02,
        "mean2": 0.1 * jax.random.normal(k[6], (plane,), jnp.float32),
        "var2": 1.0 + 0.1 * arange,
    }

    out = resblock_pallas(x, params)
    out = jax.block_until_ready(out)

    ref = jax.block_until_ready(resblock_reference(x, params))
    assert out.shape == (N, plane, H, W)
    assert jnp.allclose(out, ref, atol=1e-4, rtol=1e-4), float(jnp.max(jnp.abs(out - ref)))

    print("KERNEL_OK")
</pallas_src>

<mosaic_0001>
module attributes {stable_mosaic.version = 11 : i64} {
  func.func @kernel(%arg0: i32, %arg1: memref<1x4x256xf32, #tpu.memory_space<vmem>>, %arg2: memref<4x36xf32, #tpu.memory_space<vmem>>, %arg3: memref<4x1xf32, #tpu.memory_space<vmem>>, %arg4: memref<4x36xf32, #tpu.memory_space<vmem>>, %arg5: memref<4x1xf32, #tpu.memory_space<vmem>>, %arg6: memref<1x4x256xf32, #tpu.memory_space<vmem>>, %arg7: memref<4x290xf32, #tpu.memory_space<vmem>>, %arg8: memref<36x256xf32, #tpu.memory_space<vmem>>) attributes {dimension_semantics = [#tpu.dimension_semantics<parallel>], iteration_bounds = array<i64: 2>, scalar_prefetch = 0 : i64, scratch_operands = 2 : i64, tpu.core_type = #tpu.core_type<tc>, window_params = [{transform_indices = @transform_0, window_bounds = array<i64: 1, 4, 256>}, {pipeline_mode = #tpu.pipeline_mode<synchronous>, transform_indices = @transform_1, window_bounds = array<i64: 4, 36>}, {pipeline_mode = #tpu.pipeline_mode<synchronous>, transform_indices = @transform_2, window_bounds = array<i64: 4, 1>}, {pipeline_mode = #tpu.pipeline_mode<synchronous>, transform_indices = @transform_3, window_bounds = array<i64: 4, 36>}, {pipeline_mode = #tpu.pipeline_mode<synchronous>, transform_indices = @transform_4, window_bounds = array<i64: 4, 1>}, {transform_indices = @transform_5, window_bounds = array<i64: 1, 4, 256>}]} {
    %0 = tpu.iota {dimensions = array<i32: 1>} : vector<1x256xi32>
    %c16_i32 = arith.constant 16 : i32
    %c0_i32 = arith.constant 0 : i32
    %1 = arith.cmpi eq, %c16_i32, %c0_i32 : i32
    %c1_i32 = arith.constant 1 : i32
    %2 = arith.select %1, %c1_i32, %c16_i32 : i32
    %3 = vector.broadcast %2 : i32 to vector<1x256xi32>
    %4 = arith.remsi %0, %3 : vector<1x256xi32>
    %c0_i32_0 = arith.constant 0 : i32
    %5 = vector.broadcast %c0_i32_0 : i32 to vector<1x256xi32>
    %6 = arith.cmpi ne, %4, %5 : vector<1x256xi32>
    %c0_i32_1 = arith.constant 0 : i32
    %7 = vector.broadcast %c0_i32_1 : i32 to vector<1x256xi32>
    %8 = arith.cmpi slt, %4, %7 : vector<1x256xi32>
    %c0_i32_2 = arith.constant 0 : i32
    %9 = arith.cmpi slt, %2, %c0_i32_2 : i32
    %10 = vector.broadcast %9 : i1 to vector<1x256xi1>
    %11 = vector.broadcast %10 : vector<1x256xi1> to vector<1x256xi1>
    %12 = arith.xori %8, %11 : vector<1x256xi1>
    %13 = arith.andi %12, %6 : vector<1x256xi1>
    %14 = vector.broadcast %2 : i32 to vector<1x256xi32>
    %15 = arith.addi %4, %14 : vector<1x256xi32>
    %16 = arith.select %13, %15, %4 : vector<1x256xi1>, vector<1x256xi32>
    %c1_i32_3 = arith.constant 1 : i32
    %17 = vector.broadcast %c1_i32_3 : i32 to vector<1x256xi32>
    %18 = arith.cmpi sge, %16, %17 : vector<1x256xi32>
    %c14_i32 = arith.constant 14 : i32
    %19 = vector.broadcast %c14_i32 : i32 to vector<1x256xi32>
    %20 = arith.cmpi sle, %16, %19 : vector<1x256xi32>
    %cst = arith.constant 0.000000e+00 : f32
    %21 = vector.broadcast %cst : f32 to vector<4x290xf32>
    %c0 = arith.constant 0 : index
    %c0_4 = arith.constant 0 : index
    %22 = vector.load %arg7[%c0, %c0_4] : memref<4x290xf32, #tpu.memory_space<vmem>>, vector<4x290xf32>
    tpu.vector_store %arg7[%c0, %c0_4], %21 {strides = array<i32>} : memref<4x290xf32, #tpu.memory_space<vmem>>, vector<4x290xf32>,
    %c0_5 = arith.constant 0 : index
    %c0_6 = arith.constant 0 : index
    %c0_7 = arith.constant 0 : index
    %23 = vector.load %arg1[%c0_5, %c0_6, %c0_7] : memref<1x4x256xf32, #tpu.memory_space<vmem>>, vector<1x4x256xf32>
    %24 = vector.shape_cast %23 : vector<1x4x256xf32> to vector<4x256xf32>
    %c0_8 = arith.constant 0 : index
    %c17 = arith.constant 17 : index
    %25 = vector.load %arg7[%c0_8, %c17] : memref<4x290xf32, #tpu.memory_space<vmem>>, vector<4x256xf32>
    tpu.vector_store %arg7[%c0_8, %c17], %24 {strides = array<i32>} : memref<4x290xf32, #tpu.memory_space<vmem>>, vector<4x256xf32>,
    %c0_9 = arith.constant 0 : index
    %c0_10 = arith.constant 0 : index
    %26 = vector.load %arg7[%c0_9, %c0_10] : memref<4x290xf32, #tpu.memory_space<vmem>>, vector<4x256xf32>
    %cst_11 = arith.constant 0.000000e+00 : f32
    %27 = vector.shape_cast %18 : vector<1x256xi1> to vector<1x256xi1>
    %28 = vector.broadcast %27 : vector<1x256xi1> to vector<4x256xi1>
    %29 = vector.broadcast %cst_11 : f32 to vector<4x256xf32>
    %30 = arith.select %28, %26, %29 : vector<4x256xi1>, vector<4x256xf32>
    %c0_12 = arith.constant 0 : index
    %c0_13 = arith.constant 0 : index
    %31 = vector.load %arg8[%c0_12, %c0_13] : memref<36x256xf32, #tpu.memory_space<vmem>>, vector<4x256xf32>
    tpu.vector_store %arg8[%c0_12, %c0_13], %30 {strides = array<i32>} : memref<36x256xf32, #tpu.memory_space<vmem>>, vector<4x256xf32>,
    %c0_14 = arith.constant 0 : index
    %c1 = arith.constant 1 : index
    %32 = vector.load %arg7[%c0_14, %c1] : memref<4x290xf32, #tpu.memory_space<vmem>>, vector<4x256xf32>
    %c4 = arith.constant 4 : index
    %c0_15 = arith.constant 0 : index
    %33 = vector.load %arg8[%c4, %c0_15] : memref<36x256xf32, #tpu.memory_space<vmem>>, vector<4x256xf32>
    tpu.vector_store %arg8[%c4, %c0_15], %32 {strides = array<i32>} : memref<36x256xf32, #tpu.memory_space<vmem>>, vector<4x256xf32>,
    %c0_16 = arith.constant 0 : index
    %c2 = arith.constant 2 : index
    %34 = vector.load %arg7[%c0_16, %c2] : memref<4x290xf32, #tpu.memory_space<vmem>>, vector<4x256xf32>
    %cst_17 = arith.constant 0.000000e+00 : f32
    %35 = vector.shape_cast %20 : vector<1x256xi1> to vector<1x256xi1>
    %36 = vector.broadcast %35 : vector<1x256xi1> to vector<4x256xi1>
    %37 = vector.broadcast %cst_17 : f32 to vector<4x256xf32>
    %38 = arith.select %36, %34, %37 : vector<4x256xi1>, vector<4x256xf32>
    %c8 = arith.constant 8 : index
    %c0_18 = arith.constant 0 : index
    %39 = vector.load %arg8[%c8, %c0_18] : memref<36x256xf32, #tpu.memory_space<vmem>>, vector<4x256xf32>
    tpu.vector_store %arg8[%c8, %c0_18], %38 {strides = array<i32>} : memref<36x256xf32, #tpu.memory_space<vmem>>, vector<4x256xf32>,
    %c0_19 = arith.constant 0 : index
    %c16 = arith.constant 16 : index
    %40 = vector.load %arg7[%c0_19, %c16] : memref<4x290xf32, #tpu.memory_space<vmem>>, vector<4x256xf32>
    %cst_20 = arith.constant 0.000000e+00 : f32
    %41 = vector.shape_cast %18 : vector<1x256xi1> to vector<1x256xi1>
    %42 = vector.broadcast %41 : vector<1x256xi1> to vector<4x256xi1>
    %43 = vector.broadcast %cst_20 : f32 to vector<4x256xf32>
    %44 = arith.select %42, %40, %43 : vector<4x256xi1>, vector<4x256xf32>
    %c12 = arith.constant 12 : index
    %c0_21 = arith.constant 0 : index
    %45 = vector.load %arg8[%c12, %c0_21] : memref<36x256xf32, #tpu.memory_space<vmem>>, vector<4x256xf32>
    tpu.vector_store %arg8[%c12, %c0_21], %44 {strides = array<i32>} : memref<36x256xf32, #tpu.memory_space<vmem>>, vector<4x256xf32>,
    %c0_22 = arith.constant 0 : index
    %c17_23 = arith.constant 17 : index
    %46 = vector.load %arg7[%c0_22, %c17_23] : memref<4x290xf32, #tpu.memory_space<vmem>>, vector<4x256xf32>
    %c16_24 = arith.constant 16 : index
    %c0_25 = arith.constant 0 : index
    %47 = vector.load %arg8[%c16_24, %c0_25] : memref<36x256xf32, #tpu.memory_space<vmem>>, vector<4x256xf32>
    tpu.vector_store %arg8[%c16_24, %c0_25], %46 {strides = array<i32>} : memref<36x256xf32, #tpu.memory_space<vmem>>, vector<4x256xf32>,
    %c0_26 = arith.constant 0 : index
    %c18 = arith.constant 18 : index
    %48 = vector.load %arg7[%c0_26, %c18] : memref<4x290xf32, #tpu.memory_space<vmem>>, vector<4x256xf32>
    %cst_27 = arith.constant 0.000000e+00 : f32
    %49 = vector.shape_cast %20 : vector<1x256xi1> to vector<1x256xi1>
    %50 = vector.broadcast %49 : vector<1x256xi1> to vector<4x256xi1>
    %51 = vector.broadcast %cst_27 : f32 to vector<4x256xf32>
    %52 = arith.select %50, %48, %51 : vector<4x256xi1>, vector<4x256xf32>
    %c20 = arith.constant 20 : index
    %c0_28 = arith.constant 0 : index
    %53 = vector.load %arg8[%c20, %c0_28] : memref<36x256xf32, #tpu.memory_space<vmem>>, vector<4x256xf32>
    tpu.vector_store %arg8[%c20, %c0_28], %52 {strides = array<i32>} : memref<36x256xf32, #tpu.memory_space<vmem>>, vector<4x256xf32>,
    %c0_29 = arith.constant 0 : index
    %c32 = arith.constant 32 : index
    %54 = vector.load %arg7[%c0_29, %c32] : memref<4x290xf32, #tpu.memory_space<vmem>>, vector<4x256xf32>
    %cst_30 = arith.constant 0.000000e+00 : f32
    %55 = vector.shape_cast %18 : vector<1x256xi1> to vector<1x256xi1>
    %56 = vector.broadcast %55 : vector<1x256xi1> to vector<4x256xi1>
    %57 = vector.broadcast %cst_30 : f32 to vector<4x256xf32>
    %58 = arith.select %56, %54, %57 : vector<4x256xi1>, vector<4x256xf32>
    %c24 = arith.constant 24 : index
    %c0_31 = arith.constant 0 : index
    %59 = vector.load %arg8[%c24, %c0_31] : memref<36x256xf32, #tpu.memory_space<vmem>>, vector<4x256xf32>
    tpu.vector_store %arg8[%c24, %c0_31], %58 {strides = array<i32>} : memref<36x256xf32, #tpu.memory_space<vmem>>, vector<4x256xf32>,
    %c0_32 = arith.constant 0 : index
    %c33 = arith.constant 33 : index
    %60 = vector.load %arg7[%c0_32, %c33] : memref<4x290xf32, #tpu.memory_space<vmem>>, vector<4x256xf32>
    %c28 = arith.constant 28 : index
    %c0_33 = arith.constant 0 : index
    %61 = vector.load %arg8[%c28, %c0_33] : memref<36x256xf32, #tpu.memory_space<vmem>>, vector<4x256xf32>
    tpu.vector_store %arg8[%c28, %c0_33], %60 {strides = array<i32>} : memref<36x256xf32, #tpu.memory_space<vmem>>, vector<4x256xf32>,
    %c0_34 = arith.constant 0 : index
    %c34 = arith.constant 34 : index
    %62 = vector.load %arg7[%c0_34, %c34] : memref<4x290xf32, #tpu.memory_space<vmem>>, vector<4x256xf32>
    %cst_35 = arith.constant 0.000000e+00 : f32
    %63 = vector.shape_cast %20 : vector<1x256xi1> to vector<1x256xi1>
    %64 = vector.broadcast %63 : vector<1x256xi1> to vector<4x256xi1>
    %65 = vector.broadcast %cst_35 : f32 to vector<4x256xf32>
    %66 = arith.select %64, %62, %65 : vector<4x256xi1>, vector<4x256xf32>
    %c32_36 = arith.constant 32 : index
    %c0_37 = arith.constant 0 : index
    %67 = vector.load %arg8[%c32_36, %c0_37] : memref<36x256xf32, #tpu.memory_space<vmem>>, vector<4x256xf32>
    tpu.vector_store %arg8[%c32_36, %c0_37], %66 {strides = array<i32>} : memref<36x256xf32, #tpu.memory_space<vmem>>, vector<4x256xf32>,
    %c0_38 = arith.constant 0 : index
    %c0_39 = arith.constant 0 : index
    %68 = vector.load %arg2[%c0_38, %c0_39] : memref<4x36xf32, #tpu.memory_space<vmem>>, vector<4x36xf32>
    %c0_40 = arith.constant 0 : index
    %c0_41 = arith.constant 0 : index
    %69 = vector.load %arg8[%c0_40, %c0_41] : memref<36x256xf32, #tpu.memory_space<vmem>>, vector<36x256xf32>
    %cst_42 = arith.constant dense<0.000000e+00> : vector<4x256xf32>
    %70 = tpu.matmul %68, %69, %cst_42 {dimension_numbers = #tpu.dot_dimension_numbers<[1], [0], [0], [1], [0, 0, 1, 1], [], []>} : vector<4x36xf32>, vector<36x256xf32>, vector<4x256xf32> -> vector<4x256xf32>
    %c0_43 = arith.constant 0 : index
    %c0_44 = arith.constant 0 : index
    %71 = vector.load %arg3[%c0_43, %c0_44] : memref<4x1xf32, #tpu.memory_space<vmem>>, vector<4x1xf32>
    %72 = vector.broadcast %71 : vector<4x1xf32> to vector<4x256xf32>
    %73 = arith.addf %70, %72 : vector<4x256xf32>
    %cst_45 = arith.constant 0.000000e+00 : f32
    %74 = vector.broadcast %cst_45 : f32 to vector<4x256xf32>
    %75 = arith.maximumf %73, %74 : vector<4x256xf32>
    %c0_46 = arith.constant 0 : index
    %c17_47 = arith.constant 17 : index
    %76 = vector.load %arg7[%c0_46, %c17_47] : memref<4x290xf32, #tpu.memory_space<vmem>>, vector<4x256xf32>
    tpu.vector_store %arg7[%c0_46, %c17_47], %75 {strides = array<i32>} : memref<4x290xf32, #tpu.memory_space<vmem>>, vector<4x256xf32>,
    %c0_48 = arith.constant 0 : index
    %c0_49 = arith.constant 0 : index
    %77 = vector.load %arg7[%c0_48, %c0_49] : memref<4x290xf32, #tpu.memory_space<vmem>>, vector<4x256xf32>
    %cst_50 = arith.constant 0.000000e+00 : f32
    %78 = vector.shape_cast %18 : vector<1x256xi1> to vector<1x256xi1>
    %79 = vector.broadcast %78 : vector<1x256xi1> to vector<4x256xi1>
    %80 = vector.broadcast %cst_50 : f32 to vector<4x256xf32>
    %81 = arith.select %79, %77, %80 : vector<4x256xi1>, vector<4x256xf32>
    %c0_51 = arith.constant 0 : index
    %c0_52 = arith.constant 0 : index
    %82 = vector.load %arg8[%c0_51, %c0_52] : memref<36x256xf32, #tpu.memory_space<vmem>>, vector<4x256xf32>
    tpu.vector_store %arg8[%c0_51, %c0_52], %81 {strides = array<i32>} : memref<36x256xf32, #tpu.memory_space<vmem>>, vector<4x256xf32>,
    %c0_53 = arith.constant 0 : index
    %c1_54 = arith.constant 1 : index
    %83 = vector.load %arg7[%c0_53, %c1_54] : memref<4x290xf32, #tpu.memory_space<vmem>>, vector<4x256xf32>
    %c4_55 = arith.constant 4 : index
    %c0_56 = arith.constant 0 : index
    %84 = vector.load %arg8[%c4_55, %c0_56] : memref<36x256xf32, #tpu.memory_space<vmem>>, vector<4x256xf32>
    tpu.vector_store %arg8[%c4_55, %c0_56], %83 {strides = array<i32>} : memref<36x256xf32, #tpu.memory_space<vmem>>, vector<4x256xf32>,
    %c0_57 = arith.constant 0 : index
    %c2_58 = arith.constant 2 : index
    %85 = vector.load %arg7[%c0_57, %c2_58] : memref<4x290xf32, #tpu.memory_space<vmem>>, vector<4x256xf32>
    %cst_59 = arith.constant 0.000000e+00 : f32
    %86 = vector.shape_cast %20 : vector<1x256xi1> to vector<1x256xi1>
    %87 = vector.broadcast %86 : vector<1x256xi1> to vector<4x256xi1>
    %88 = vector.broadcast %cst_59 : f32 to vector<4x256xf32>
    %89 = arith.select %87, %85, %88 : vector<4x256xi1>, vector<4x256xf32>
    %c8_60 = arith.constant 8 : index
    %c0_61 = arith.constant 0 : index
    %90 = vector.load %arg8[%c8_60, %c0_61] : memref<36x256xf32, #tpu.memory_space<vmem>>, vector<4x256xf32>
    tpu.vector_store %arg8[%c8_60, %c0_61], %89 {strides = array<i32>} : memref<36x256xf32, #tpu.memory_space<vmem>>, vector<4x256xf32>,
    %c0_62 = arith.constant 0 : index
    %c16_63 = arith.constant 16 : index
    %91 = vector.load %arg7[%c0_62, %c16_63] : memref<4x290xf32, #tpu.memory_space<vmem>>, vector<4x256xf32>
    %cst_64 = arith.constant 0.000000e+00 : f32
    %92 = vector.shape_cast %18 : vector<1x256xi1> to vector<1x256xi1>
    %93 = vector.broadcast %92 : vector<1x256xi1> to vector<4x256xi1>
    %94 = vector.broadcast %cst_64 : f32 to vector<4x256xf32>
    %95 = arith.select %93, %91, %94 : vector<4x256xi1>, vector<4x256xf32>
    %c12_65 = arith.constant 12 : index
    %c0_66 = arith.constant 0 : index
    %96 = vector.load %arg8[%c12_65, %c0_66] : memref<36x256xf32, #tpu.memory_space<vmem>>, vector<4x256xf32>
    tpu.vector_store %arg8[%c12_65, %c0_66], %95 {strides = array<i32>} : memref<36x256xf32, #tpu.memory_space<vmem>>, vector<4x256xf32>,
    %c0_67 = arith.constant 0 : index
    %c17_68 = arith.constant 17 : index
    %97 = vector.load %arg7[%c0_67, %c17_68] : memref<4x290xf32, #tpu.memory_space<vmem>>, vector<4x256xf32>
    %c16_69 = arith.constant 16 : index
    %c0_70 = arith.constant 0 : index
    %98 = vector.load %arg8[%c16_69, %c0_70] : memref<36x256xf32, #tpu.memory_space<vmem>>, vector<4x256xf32>
    tpu.vector_store %arg8[%c16_69, %c0_70], %97 {strides = array<i32>} : memref<36x256xf32, #tpu.memory_space<vmem>>, vector<4x256xf32>,
    %c0_71 = arith.constant 0 : index
    %c18_72 = arith.constant 18 : index
    %99 = vector.load %arg7[%c0_71, %c18_72] : memref<4x290xf32, #tpu.memory_space<vmem>>, vector<4x256xf32>
    %cst_73 = arith.constant 0.000000e+00 : f32
    %100 = vector.shape_cast %20 : vector<1x256xi1> to vector<1x256xi1>
    %101 = vector.broadcast %100 : vector<1x256xi1> to vector<4x256xi1>
    %102 = vector.broadcast %cst_73 : f32 to vector<4x256xf32>
    %103 = arith.select %101, %99, %102 : vector<4x256xi1>, vector<4x256xf32>
    %c20_74 = arith.constant 20 : index
    %c0_75 = arith.constant 0 : index
    %104 = vector.load %arg8[%c20_74, %c0_75] : memref<36x256xf32, #tpu.memory_space<vmem>>, vector<4x256xf32>
    tpu.vector_store %arg8[%c20_74, %c0_75], %103 {strides = array<i32>} : memref<36x256xf32, #tpu.memory_space<vmem>>, vector<4x256xf32>,
    %c0_76 = arith.constant 0 : index
    %c32_77 = arith.constant 32 : index
    %105 = vector.load %arg7[%c0_76, %c32_77] : memref<4x290xf32, #tpu.memory_space<vmem>>, vector<4x256xf32>
    %cst_78 = arith.constant 0.000000e+00 : f32
    %106 = vector.shape_cast %18 : vector<1x256xi1> to vector<1x256xi1>
    %107 = vector.broadcast %106 : vector<1x256xi1> to vector<4x256xi1>
    %108 = vector.broadcast %cst_78 : f32 to vector<4x256xf32>
    %109 = arith.select %107, %105, %108 : vector<4x256xi1>, vector<4x256xf32>
    %c24_79 = arith.constant 24 : index
    %c0_80 = arith.constant 0 : index
    %110 = vector.load %arg8[%c24_79, %c0_80] : memref<36x256xf32, #tpu.memory_space<vmem>>, vector<4x256xf32>
    tpu.vector_store %arg8[%c24_79, %c0_80], %109 {strides = array<i32>} : memref<36x256xf32, #tpu.memory_space<vmem>>, vector<4x256xf32>,
    %c0_81 = arith.constant 0 : index
    %c33_82 = arith.constant 33 : index
    %111 = vector.load %arg7[%c0_81, %c33_82] : memref<4x290xf32, #tpu.memory_space<vmem>>, vector<4x256xf32>
    %c28_83 = arith.constant 28 : index
    %c0_84 = arith.constant 0 : index
    %112 = vector.load %arg8[%c28_83, %c0_84] : memref<36x256xf32, #tpu.memory_space<vmem>>, vector<4x256xf32>
    tpu.vector_store %arg8[%c28_83, %c0_84], %111 {strides = array<i32>} : memref<36x256xf32, #tpu.memory_space<vmem>>, vector<4x256xf32>,
    %c0_85 = arith.constant 0 : index
    %c34_86 = arith.constant 34 : index
    %113 = vector.load %arg7[%c0_85, %c34_86] : memref<4x290xf32, #tpu.memory_space<vmem>>, vector<4x256xf32>
    %cst_87 = arith.constant 0.000000e+00 : f32
    %114 = vector.shape_cast %20 : vector<1x256xi1> to vector<1x256xi1>
    %115 = vector.broadcast %114 : vector<1x256xi1> to vector<4x256xi1>
    %116 = vector.broadcast %cst_87 : f32 to vector<4x256xf32>
    %117 = arith.select %115, %113, %116 : vector<4x256xi1>, vector<4x256xf32>
    %c32_88 = arith.constant 32 : index
    %c0_89 = arith.constant 0 : index
    %118 = vector.load %arg8[%c32_88, %c0_89] : memref<36x256xf32, #tpu.memory_space<vmem>>, vector<4x256xf32>
    tpu.vector_store %arg8[%c32_88, %c0_89], %117 {strides = array<i32>} : memref<36x256xf32, #tpu.memory_space<vmem>>, vector<4x256xf32>,
    %c0_90 = arith.constant 0 : index
    %c0_91 = arith.constant 0 : index
    %119 = vector.load %arg4[%c0_90, %c0_91] : memref<4x36xf32, #tpu.memory_space<vmem>>, vector<4x36xf32>
    %c0_92 = arith.constant 0 : index
    %c0_93 = arith.constant 0 : index
    %120 = vector.load %arg8[%c0_92, %c0_93] : memref<36x256xf32, #tpu.memory_space<vmem>>, vector<36x256xf32>
    %cst_94 = arith.constant dense<0.000000e+00> : vector<4x256xf32>
    %121 = tpu.matmul %119, %120, %cst_94 {dimension_numbers = #tpu.dot_dimension_numbers<[1], [0], [0], [1], [0, 0, 1, 1], [], []>} : vector<4x36xf32>, vector<36x256xf32>, vector<4x256xf32> -> vector<4x256xf32>
    %c0_95 = arith.constant 0 : index
    %c0_96 = arith.constant 0 : index
    %122 = vector.load %arg5[%c0_95, %c0_96] : memref<4x1xf32, #tpu.memory_space<vmem>>, vector<4x1xf32>
    %123 = vector.broadcast %122 : vector<4x1xf32> to vector<4x256xf32>
    %124 = arith.addf %121, %123 : vector<4x256xf32>
    %125 = arith.addf %124, %24 : vector<4x256xf32>
    %cst_97 = arith.constant 0.000000e+00 : f32
    %126 = vector.broadcast %cst_97 : f32 to vector<4x256xf32>
    %127 = arith.maximumf %125, %126 : vector<4x256xf32>
    %c0_98 = arith.constant 0 : index
    %c0_99 = arith.constant 0 : index
    %c0_100 = arith.constant 0 : index
    %128 = vector.load %arg6[%c0_98, %c0_99, %c0_100] : memref<1x4x256xf32, #tpu.memory_space<vmem>>, vector<1x4x256xf32>
    %129 = vector.shape_cast %128 : vector<1x4x256xf32> to vector<4x256xf32>
    %130 = vector.shape_cast %127 : vector<4x256xf32> to vector<1x4x256xf32>
    tpu.vector_store %arg6[%c0_98, %c0_99, %c0_100], %130 {strides = array<i32>} : memref<1x4x256xf32, #tpu.memory_space<vmem>>, vector<1x4x256xf32>,
    return
  }
  func.func @transform_0(%arg0: i32) -> (i32, i32, i32) {
    %c0_i32 = arith.constant 0 : i32
    %c0_i32_0 = arith.constant 0 : i32
    %c0_i32_1 = arith.constant 0 : i32
    return %arg0, %c0_i32, %c0_i32_0 : i32, i32, i32
  }
  func.func @transform_1(%arg0: i32) -> (i32, i32) {
    %c0_i32 = arith.constant 0 : i32
    %c0_i32_0 = arith.constant 0 : i32
    %c0_i32_1 = arith.constant 0 : i32
    return %c0_i32, %c0_i32_0 : i32, i32
  }
  func.func @transform_2(%arg0: i32) -> (i32, i32) {
    %c0_i32 = arith.constant 0 : i32
    %c0_i32_0 = arith.constant 0 : i32
    %c0_i32_1 = arith.constant 0 : i32
    return %c0_i32, %c0_i32_0 : i32, i32
  }
  func.func @transform_3(%arg0: i32) -> (i32, i32) {
    %c0_i32 = arith.constant 0 : i32
    %c0_i32_0 = arith.constant 0 : i32
    %c0_i32_1 = arith.constant 0 : i32
    return %c0_i32, %c0_i32_0 : i32, i32
  }
  func.func @transform_4(%arg0: i32) -> (i32, i32) {
    %c0_i32 = arith.constant 0 : i32
    %c0_i32_0 = arith.constant 0 : i32
    %c0_i32_1 = arith.constant 0 : i32
    return %c0_i32, %c0_i32_0 : i32, i32
  }
  func.func @transform_5(%arg0: i32) -> (i32, i32, i32) {
    %c0_i32 = arith.constant 0 : i32
    %c0_i32_0 = arith.constant 0 : i32
    %c0_i32_1 = arith.constant 0 : i32
    return %arg0, %c0_i32, %c0_i32_0 : i32, i32, i32
  }
}

</mosaic_0001>

<bundles_post_ra>
// kernel: tpu_custom_call.1
= control target key start
LH: loop header
LB: loop body
LE: loop exit
PB: predicated region body
PF: predicated region fallthrough
CT: control target
= control target key end

     0   :  { %10 = vsyncpa [#allocation5], 0  ;;  %s1563_s0 = inlined_call_operand.hbm [shape: f32[2,4,256], index: 0, kind: input, shape index: {}]   ;;  %s1564_s1 = inlined_call_operand.vmem [shape: f32[4,36], index: 1, kind: input, shape index: {}]   ;;  %s1565_s2 = inlined_call_operand.vmem [shape: f32[4,1], index: 2, kind: input, shape index: {}]   ;;  %s1566_s3 = inlined_call_operand.vmem [shape: f32[4,36], index: 3, kind: input, shape index: {}]   ;;  %s1567_s4 = inlined_call_operand.vmem [shape: f32[4,1], index: 4, kind: input, shape index: {}]   ;;  %s1568_s5 = inlined_call_operand.hbm [shape: f32[2,4,256], index: 5, kind: output, shape index: {}]  }
   0x1   :  { %12 = vsyncpa [#allocation5 + $0x1], 0 }
   0x2   :  { %13 = vsyncpa [#allocation6], 0 }
   0x3   :  { %15 = vsyncpa [#allocation6 + $0x1], 0  ;;  %s1194_s18 = smov 0   ;;  %s1196_s19 = smov 0  }
   0x4   :  { %s1198_s20 = smov 0   ;;  %s1200_s21 = smov 0  }
   0x5 LB: > { %s1215_s22 = sadd.s32 4294967295, %s1149_s21   ;;  %s947_s23 = sadd.s32 4294967294, %s1149_s21   ;;  %s1149_s21 = sphi %s1200_s21, %s1596_s21   ;;  %s1145_s20 = sphi %s1198_s20, %s1595_s20   ;;  %s1141_s19 = sphi %s1196_s19, %s1594_s19   ;;  %s1137_s18 = sphi %s1194_s18, %s1593_s18  }
   0x6   : > { %s1219_s24 = sadd.s32 1, %s1149_s21   ;;  %s28_s25 = sadd.s32 1, %s1145_s20 }
   0x7   : > { %s25_s26 = ssub.s32 %s1149_s21, %s1219_s24  ;;  %p35_p0 = scmp.ne.s32.totalorder %s1145_s20, %s1141_s19 }
   0x8   : > { %p26_p1 = scmp.eq.s32.totalorder %s25_s26, 0  ;;  %p36_p2 = scmp.eq.s32.totalorder %s1149_s21, 0 }
   0x9   : > { %p41_p3 = scmp.ne.s32.totalorder %s1141_s19, %s1137_s18  ;;  %p42_p4 = scmp.eq.s32.totalorder %s1215_s22, 0 }
   0xa   : > { %s1231_s27 = scalar_select %p26_p1, %s1145_s20, %s28_s25  }
   0xb   : > { %p1233_p5 = por %p36_p2, %p35_p0  ;;  %p1237_p6 = por %p42_p4, %p41_p3 }
   0xc   : > { %p149_p7 = scmp.eq.s32.totalorder %s1215_s22, 1  ;;  %p155_p8 = scmp.eq.s32.totalorder %s947_s23, 1 }
   0xd   : > { %p997_p10 = scmp.lt.s32.totalorder %s1149_s21, 2  ;;  %s187_s7 = sand.u32 1, %s1145_s20  }
   0xe   : > { %p1244_p11 = por %p149_p7, %p35_p0  ;;  %p1248_p12 = por %p155_p8, %p41_p3 }
   0xf   : > { %s967_s8 = sshll.u32 %s1149_s21, 7  ;;  %s950_s9 = sshll.u32 %s187_s7, 3 }
  0x10   : > { %s1573_s30 = scalar_select %p1244_p11, 1, 0 }
  0x11   : > { %s1574_s6 = scalar_select %p1248_p12, 1, 0 }
  0x12   : > { %s1257_s12 = scalar_lea.hbm %s1563_s0, %s967_s8  ;;  %s191_s13 = scalar_lea.vmem [#allocation4], %s950_s9 }
  0x13   : > { %s199_s14 = sshll.u32 %s191_s13, 4  ;;  %p1261_p13 = pnand %p997_p10, %p1233_p5  ;;  %s1265_s14 = int_to_ptr.vmem [resolvable:$true] %s199_s14 }
  0x14   : > { %s188_s16 = scalar_lea.sflag [#allocation5], %s187_s7  ;;  %s1053_s17 = scalar_lea.hbm %s1257_s12, 128 }
  0x15   : > { %p1054_p2 = scmp.ne.s32.totalorder %s1257_s12, %s1053_s17  ;;  %p1055_p3 = pneg %p1261_p13 }
  0x16   : > { %s1058_s26 = scalar_lea.hbm %s1563_s0, 256  ;;  %p1059_p5 = scmp.lt.u32.totalorder %s1257_s12, %s1563_s0 }
  0x17   : > { %p1056_p4 = pnand %p1055_p3, %p1054_p2  ;;  %p1060_p8 = scmp.lt.u32.totalorder %s1058_s26, %s1053_s17 }
  0x18   : > { %p1062_p9 = scmp.lt.u32.totalorder %s1053_s17, %s1257_s12 }
  0x19   : > { %p1057_p7 = pneg %p1056_p4  ;;  %p1061_p10 = por %p1060_p8, %p1059_p5 }
  0x1b   : > { %p1063_p0 = por %p1062_p9, %p1061_p10 }
  0x1d   : > { %p1064_p1 = pnand %p1063_p0, %p1057_p7 }
  0x1f   : > { %1067 = shalt.err (!%p1064_p1)
}
  0x20   : > { %s1068_s7 = scalar_lea.vmem %s1265_s14, 128  ;;  %s1151_s9 = smov [#allocation4]  }
  0x21   : > { %p1069_p2 = scmp.ne.s32.totalorder %s1265_s14, %s1068_s7  ;;  %s1073_s10 = sshll.u32 %s1151_s9, 4  ;;  %s1074_s10 = int_to_ptr.vmem [resolvable:$false] %s1073_s10 }
  0x22   : > { %s1075_s11 = scalar_lea.vmem %s1074_s10, 256  ;;  %p1076_p11 = scmp.lt.s32.totalorder %s1265_s14, %s1074_s10 }
  0x23   : > { %p1071_p4 = pnand %p1069_p2, %p1055_p3  ;;  %p1077_p5 = scmp.lt.s32.totalorder %s1075_s11, %s1068_s7 }
  0x25   : > { %p1072_p12 = pneg %p1071_p4  ;;  %p1078_p8 = por %p1077_p5, %p1076_p11 }
  0x27   : > { %p1079_p9 = pnand %p1078_p8, %p1072_p12 }
  0x29   : > { %1082 = shalt.err (!%p1079_p9)
}
  0x2a   : > { %992 = dma.hbm_to_vmem [thread:$0]  (!%p1261_p13), %s1257_s12, 128, %s1265_s14, %s188_s16  }
  0x2b   : > { %p1576_p0 = scmp.lt.s32.totalorder %s1149_s21, 3  ;;  %p1577_p1 = scmp.ge.s32.totalorder %s1149_s21, 1 }
  0x2d   : > { %p205_p3 = pnand %p1577_p1, %p1576_p0 }
  0x2e   : > { %s1299_s13 = sand.u32 (!%p205_p3), 1, %s1141_s19  }
  0x2f   : > { %208 = sbr.rel (%p205_p3) target bundleno = 1105 (0x451), region = 40  ;;  %s954_s17 = sshll.u32 (!%p205_p3), %s1299_s13, 3 }
  0x30   : > { %s211_s23 = scalar_lea.sflag (!%p205_p3), [#allocation5], %s1299_s13  ;;  %s214_s15 = scalar_lea.vmem (!%p205_p3), [#allocation4], %s954_s17 }
  0x36   : > { %1128 = dma.done.wait (%p1237_p6), %s211_s23, 128  }
  0x37   : > { %1130 = vsyncadd (%p1237_p6), %s211_s23, 4294967168  ;;  %vm273_vm0 = vcmask 273408   ;;  %v1152_v0 = vmov 0.0   ;;  %v1309_v1 = vld [vmem:[%s214_s15] sm:$0xff]  ;;  %s1153_s12 = smov 17   ;;  %v241_v2 = vlaneseq  ;;  %vm284_vm1 = vcmask 1043592  }
  0x38   : > { %272 = vst [vmem:[#allocation2] sm:$0xff] %v1152_v0  ;;  %274 = vst.msk [vmem:[#allocation2 + $0x8] sm:$0xf] %vm273_vm0, %v1152_v0  ;;  %566 = vmatprep.mubr.f32.mxu0 %v1152_v0  ;;  %844 = vmatprep.mubr.f32.mxu1 %v1152_v0  ;;  %vm285_vm2 = vcmask 1047556   ;;  %vm280_vm3 = vcmask 138240   ;;  %vm288_vm4 = vcmask 134144   ;;  %v851_v51 = vcombine.high %v1309_v1, %v1309_v1 }
  0x39   : > { %277 = vrot.lane.b32.xlu0 %v1309_v1, %s1153_s12  ;;  %v1313_v3 = vand.u32 127, %v241_v2  ;;  %vm1315_vm5 = vmor %vm285_vm2, %vm284_vm1  ;;  %s1154_s29 = smov 96   ;;  %s1155_s14 = smov 112   ;;  %v1162_v26 = vmov 0   ;;  %v485_v27 = vld [vmem:[%s1565_s2] sm:$0xf] }
  0x3a   : > { %s1156_s16 = smov 111   ;;  %s1157_s25 = smov 126   ;;  %1042 = vset.pattern.permute.xlu1 %v1162_v26  ;;  %1043 = vset.pattern.permute.xlu0 %v1162_v26  ;;  %vm314_vm8 = vcmask 1039360   ;;  %vm447_vm9 = vcmask 777216   ;;  %vm356_vm10 = vcmask 916480   ;;  %vm336_vm11 = vcmask 1031168  }
  0x3b   : > { %v1322_v8 = vadd.s32 128, %v1313_v3  ;;  %v248_v9 = vand.u32 15, %v1313_v3  ;;  %s1158_s26 = smov 110   ;;  %s1159_s28 = smov 127   ;;  %vm400_vm14 = vcmask 900096   ;;  %vm426_vm15 = vcmask 785408  }
  0x3c   : > { %s1160_s8 = smov 95   ;;  %s1161_s7 = smov 94   ;;  %vm382_vm0 = vcmask 908288   ;;  %vm1570_vm1 = vcmask 769024   ;;  %vm495_vm2 = vcmask 1043456  }
  0x3d   : > { %v255_v10 = vand.u32 15, %v1322_v8  ;;  %vm1330_vm6 = vcmp.ge.s32.totalorder %v248_v9, 1  ;;  %vm1386_vm12 = vcmp.le.s32.totalorder %v248_v9, 14  ;;  %v754_v50 = vld [vmem:[%s1566_s3] sm:$0xf]  ;;  %s863_s9 = scalar_lea.sflag [#allocation6], %s1299_s13 }
  0x3e   : > { %p1590_p11 = scmp.ne.s32.totalorder %s1573_s30, 0 }
  0x3f   : > { %vm1338_vm7 = vcmp.ge.s32.totalorder %v255_v10, 1  ;;  %vm1392_vm13 = vcmp.le.s32.totalorder %v255_v10, 14 }
  0xab   : > { %v278_v4 = vpop.permute.xlu0 %277 }
  0xac   : > { %v279_v6 = vrot.slane %v278_v4, 4 }
  0xae   : > { %v281_v7 = vsel %vm280_vm3, %v279_v6, %v278_v4  ;;  %289 = vst.msk [vmem:[#allocation2 + $0x8] sm:$0xf] %vm288_vm4, %v279_v6 }
  0xaf   : > { %287 = vst.msk [vmem:[#allocation2] sm:$0xff] %vm1315_vm5, %v281_v7 }
  0xb5   : > { %v416_v11 = vld [vmem:[#allocation2 + $0x8] sm:$0xf] }
  0xb6   : > { %v346_v12 = vld [vmem:[#allocation2 + $0x8] sm:$0xf]  ;;  %424 = vrot.lane.b32.xlu0 %v416_v11, %s1154_s29  ;;  %v302_v14 = vld [vmem:[#allocation2] sm:$0xff] }
  0xb7   : > { %354 = vrot.lane.b32.xlu1 %v346_v12, %s1155_s14  ;;  %v349_v16 = vcombine.high %v302_v14, %v302_v14  ;;  %v298_v17 = vsel %vm1330_vm6, %v302_v14, 0.0  ;;  %v372_v18 = vld [vmem:[#allocation2 + $0x8] sm:$0xf]  ;;  %v306_v24 = vcombine.low %v302_v14, %v302_v14 }
  0xb8   : > { %v322_v19 = vld [vmem:[#allocation2 + $0x8] sm:$0xf]  ;;  %300 = vst [vmem:[#allocation3] sm:$0xf] %v298_v17 }
  0xb9   : > { %v299_v20 = vsel %vm1338_vm7, %v349_v16, 0.0  ;;  %v390_v21 = vld [vmem:[#allocation2 + $0x8] sm:$0xf] }
  0xba   : > { %380 = vrot.lane.b32.xlu0 %v372_v18, %s1156_s16  ;;  %301 = vst [vmem:[#allocation3 + $0x8] sm:$0xf] %v299_v20  ;;  %v1045_v22 = vld [vmem:[#allocation2 + $0x8] ss:$0 sps:$4 sm:$0xff]  }
  0xbb   : > { %334 = vrot.lane.b32.xlu1 %v322_v19, %s1157_s25  ;;  %v1046_v23 = vld [vmem:[#allocation2 + $0x8] ss:$0 sps:$4 sm:$0xff]  }
  0xbc   : > { %v455_v25 = vld [vmem:[#allocation2 + $0x8] sm:$0xf] }
  0xbe   : > { %310 = vrot.lane.b32.xlu0 %v302_v14, %s1159_s28 }
  0xbf   : > { %398 = vrot.lane.b32.xlu1 %v390_v21, %s1158_s26 }
  0xc2   : > { %330 = vrot.lane.b32.xlu0 %v302_v14, %s1157_s25 }
  0xc3   : > { %350 = vrot.lane.b32.xlu1 %v302_v14, %s1155_s14 }
  0xc6   : > { %394 = vrot.lane.b32.xlu0 %v302_v14, %s1158_s26 }
  0xc7   : > { %420 = vrot.lane.b32.xlu1 %v302_v14, %s1154_s29 }
  0xca   : > { %443 = vrot.lane.b32.xlu0 %v302_v14, %s1160_s8 }
  0xcb   : > { %312 = vrot.lane.b32.xlu1 %v1045_v22, %s1159_s28 }
  0xce   : > { %352 = vrot.lane.b32.xlu0 %v349_v16, %s1155_s14 }
  0xcf   : > { %445 = vrot.lane.b32.xlu1 %v1046_v23, %s1160_s8 }
  0xd2   : > { %332 = vrot.lane.b32.xlu0 %v349_v16, %s1157_s25 }
  0xd3   : > { %308 = vrot.lane.b32.xlu1 %v306_v24, %s1159_s28 }
  0xd6   : > { %396 = vrot.lane.b32.xlu0 %v349_v16, %s1158_s26 }
  0xd7   : > { %422 = vrot.lane.b32.xlu1 %v349_v16, %s1154_s29 }
  0xda   : > { %376 = vrot.lane.b32.xlu0 %v302_v14, %s1156_s16 }
  0xdb   : > { %378 = vrot.lane.b32.xlu1 %v349_v16, %s1156_s16 }
  0xde   : > { %461 = vrot.lane.b32.xlu0 %v349_v16, %s1161_s7 }
  0xdf   : > { %441 = vrot.lane.b32.xlu1 %v306_v24, %s1160_s8 }
  0xe2   : > { %459 = vrot.lane.b32.xlu0 %v302_v14, %s1161_s7 }
  0xe3   : > { %463 = vrot.lane.b32.xlu1 %v455_v25, %s1161_s7 }
  0xe7   : > { %488 = vperm.xlu1 %1042, %v485_v27  }
 0x128   : > { %v425_v28 = vpop.permute.xlu0 %424 }
 0x129   : > { %v355_v29 = vpop.permute.xlu1 %354 }
 0x12c   : > { %v1371_v30 = vpop.permute.xlu0 %380 }
 0x12d   : > { %v335_v31 = vpop.permute.xlu1 %334 }
 0x130   : > { %v311_v33 = vpop.permute.xlu0 %310 }
 0x131   : > { %v399_v32 = vpop.permute.xlu1 %398 }
 0x134   : > { %v331_v35 = vpop.permute.xlu0 %330 }
 0x135   : > { %v351_v34 = vpop.permute.xlu1 %350 }
 0x138   : > { %v395_v37 = vpop.permute.xlu0 %394 }
 0x139   : > { %v421_v36 = vpop.permute.xlu1 %420 }
 0x13c   : > { %v1373_v39 = vpop.permute.xlu0 %443 }
 0x13d   : > { %v313_v38 = vpop.permute.xlu1 %312 }
 0x13e   : > { %v316_v40 = vsel %vm314_vm8, %v311_v33, %v313_v38 }
 0x13f   : > { %320 = vst [vmem:[#allocation3 + $0x8] sm:$0xf0] %v316_v40 }
 0x140   : > { %v353_v42 = vpop.permute.xlu0 %352 }
 0x141   : > { %v446_v41 = vpop.permute.xlu1 %445  ;;  %v357_v44 = vsel %vm356_vm10, %v351_v34, %v353_v42  ;;  %v358_v45 = vsel %vm356_vm10, %v353_v42, %v355_v29 }
 0x142   : > { %v449_v43 = vsel %vm447_vm9, %v1373_v39, %v446_v41  ;;  %v361_v46 = vsel %vm1330_vm6, %v357_v44, 0.0  ;;  %v362_v47 = vsel %vm1338_vm7, %v358_v45, 0.0 }
 0x143   : > { %453 = vst [vmem:[#allocation3 + $0x38] sm:$0xf0] %v449_v43  ;;  %v365_v48 = vrot.slane %v361_v46, 4  ;;  %v366_v49 = vrot.slane %v362_v47, 4 }
 0x144   : > { %v333_v52 = vpop.permute.xlu0 %332 }
 0x145   : > { %v309_v53 = vpop.permute.xlu1 %308  ;;  %369 = vst [vmem:[#allocation3 + $0x10] sm:$0xf0] %v365_v48  ;;  %370 = vst [vmem:[#allocation3 + $0x18] sm:$0xf0] %v366_v49  ;;  %v337_v54 = vsel %vm336_vm11, %v331_v35, %v333_v52  ;;  %v338_v55 = vsel %vm336_vm11, %v333_v52, %v335_v31 }
 0x146   : > { %v315_v56 = vsel %vm314_vm8, %v309_v53, %v311_v33  ;;  %v341_v57 = vsel %vm1386_vm12, %v337_v54, 0.0  ;;  %v342_v58 = vsel %vm1392_vm13, %v338_v55, 0.0  ;;  %v476_v16 = vld [vmem:[#allocation3 + $0x8] sm:$0xff] }
 0x147   : > { %319 = vst [vmem:[#allocation3] sm:$0xf0] %v315_v56  ;;  %343 = vst [vmem:[#allocation3 + $0x10] sm:$0xf] %v341_v57 }
 0x148   : > { %344 = vst [vmem:[#allocation3 + $0x18] sm:$0xf] %v342_v58  ;;  %v397_v59 = vpop.permute.xlu0 %396 }
 0x149   : > { %v423_v60 = vpop.permute.xlu1 %422  ;;  %v401_v61 = vsel %vm400_vm14, %v395_v37, %v397_v59  ;;  %v402_v62 = vsel %vm400_vm14, %v397_v59, %v399_v32 }
 0x14a   : > { %v427_v63 = vsel %vm426_vm15, %v421_v36, %v423_v60  ;;  %v428_v0 = vsel %vm426_vm15, %v423_v60, %v425_v28  ;;  %v405_v2 = vsel %vm1386_vm12, %v401_v61, 0.0  ;;  %v406_v3 = vsel %vm1392_vm13, %v402_v62, 0.0  ;;  %v474_v36 = vld [vmem:[%s1564_s1] sm:$0xf] }
 0x14b   : > { %v431_v4 = vsel %vm1330_vm6, %v427_v63, 0.0  ;;  %v432_v6 = vsel %vm1338_vm7, %v428_v0, 0.0  ;;  %v409_v7 = vrot.slane %v405_v2, 4  ;;  %v410_v8 = vrot.slane %v406_v3, 4  ;;  %v765_v0 = vld [vmem:[%s1567_s4] sm:$0xf] }
 0x14c   : > { %433 = vst [vmem:[#allocation3 + $0x30] sm:$0xf] %v431_v4  ;;  %434 = vst [vmem:[#allocation3 + $0x38] sm:$0xf] %v432_v6  ;;  %v377_v9 = vpop.permute.xlu0 %376 }
 0x14d   : > { %v379_v10 = vpop.permute.xlu1 %378  ;;  %413 = vst [vmem:[#allocation3 + $0x20] sm:$0xf0] %v409_v7  ;;  %414 = vst [vmem:[#allocation3 + $0x28] sm:$0xf0] %v410_v8 }
 0x14e   : > { %v383_v11 = vsel %vm382_vm0, %v377_v9, %v379_v10  ;;  %v384_v12 = vsel %vm382_vm0, %v379_v10, %v1371_v30  ;;  %v475_v14 = vld [vmem:[#allocation3] sm:$0xff]  ;;  %v477_v18 = vld [vmem:[#allocation3 + $0x10] sm:$0xff] }
 0x14f   : > { %387 = vst [vmem:[#allocation3 + $0x20] sm:$0xf] %v383_v11  ;;  %388 = vst [vmem:[#allocation3 + $0x28] sm:$0xf] %v384_v12  ;;  %v478_v17 = vld [vmem:[#allocation3 + $0x18] sm:$0xff]  ;;  %v971_v20 = vpack.c.bf16 %v477_v18, %v475_v14 }
 0x150   : > { %v969_v19 = vpack.c.bf16 %v478_v17, %v476_v16  ;;  %v462_v21 = vpop.permute.xlu0 %461 }
 0x151   : > { %v442_v22 = vpop.permute.xlu1 %441 }
 0x152   : > { %v448_v23 = vsel %vm447_vm9, %v442_v22, %v1373_v39  ;;  %970 = vmatprep.subr.bf16.mxu0 %v969_v19 }
 0x153   : > { %452 = vst [vmem:[#allocation3 + $0x30] sm:$0xf0] %v448_v23  ;;  %972 = vmatpush1.bf16.msra.mxu0 %v971_v20  ;;  %v482_v29 = vld [vmem:[#allocation3 + $0x38] sm:$0xff] }
 0x154   : > { %v460_v24 = vpop.permute.xlu0 %459 }
 0x155   : > { %v464_v25 = vpop.permute.xlu1 %463  ;;  %v466_v26 = vsel %vm1570_vm1, %v460_v24, %v462_v21 }
 0x156   : > { %v467_v27 = vsel %vm1570_vm1, %v462_v21, %v464_v25  ;;  %v480_v28 = vld [vmem:[#allocation3 + $0x28] sm:$0xff]  ;;  %v470_v30 = vsel %vm1386_vm12, %v466_v26, 0.0  ;;  %v479_v33 = vld [vmem:[#allocation3 + $0x20] sm:$0xff]  ;;  %vm491_vm1 = vcmask 293888  }
 0x157   : > { %v471_v31 = vsel %vm1392_vm13, %v467_v27, 0.0  ;;  %v973_v32 = vpack.c.bf16 %v482_v29, %v480_v28  ;;  %472 = vst [vmem:[#allocation3 + $0x40] sm:$0xf] %v470_v30 }
 0x158   : > { %473 = vst [vmem:[#allocation3 + $0x48] sm:$0xf] %v471_v31 }
 0x159   : > { %974 = vmatprep.subr.bf16.mxu0 %v973_v32 }
 0x15a   : > { %v481_v34 = vld [vmem:[#allocation3 + $0x30] sm:$0xff] }
 0x15b   : > { %v975_v35 = vpack.c.bf16 %v481_v34, %v479_v33 }
 0x15d   : > { %976 = vmatpush1.bf16.msra.mxu0 %v975_v35 }
 0x15e   : > { %v483_v38 = vld [vmem:[#allocation3 + $0x40] sm:$0xf] }
 0x15f   : > { %v484_v37 = vld [vmem:[#allocation3 + $0x48] sm:$0xf] }
 0x160   : > { %956 = vmatprep.subr.msk.mxu0 %vm495_vm2, %v484_v37 }
 0x161   : > { %957 = vmatpush1.msk.msra.mxu0 %vm495_vm2, %v483_v38 }
 0x162   : > { %958 = vmatmul.mubr.msk.f32.vlgmr.msra.gmra.mrb[0].mxu0 %vm491_vm1, %v474_v36 }
 0x166   : > { %v489_v39 = vpop.permute.xlu1 %488 }
 0x235   : > { %v568_v40 = vpop.f32.mrb[0].mxu0 }
 0x236   : > { %v569_v41 = vadd.f32 %v568_v40, %v489_v39  ;;  %v570_v42 = vpop.f32.mrb[1].mxu0 }
 0x237   : > { %v571_v43 = vadd.f32 %v570_v42, %v489_v39 }
 0x238   : > { %v573_v44 = vmax.f32 %v569_v41, 0.0 }
 0x239   : > { %v574_v45 = vmax.f32 %v571_v43, 0.0 }
 0x23b   : > { %v577_v46 = vcombine.low %v573_v44, %v574_v45 }
 0x23d   : > { %578 = vrot.lane.b32.xlu0 %v577_v46, %s1153_s12 }
 0x2af   : > { %v579_v47 = vpop.permute.xlu0 %578 }
 0x2b0   : > { %v580_v48 = vrot.slane %v579_v47, 4 }
 0x2b2   : > { %v581_v49 = vsel %vm280_vm3, %v580_v48, %v579_v47  ;;  %585 = vst.msk [vmem:[#allocation2 + $0x8] sm:$0xf] %vm288_vm4, %v580_v48  ;;  %vm1588_vm3 = vcmask 769024  }
 0x2b3   : > { %584 = vst.msk [vmem:[#allocation2] sm:$0xff] %vm1315_vm5, %v581_v49  ;;  %vm1589_vm4 = vmmov %vm1588_vm3 }
 0x2b9   : > { %v632_v52 = vld [vmem:[#allocation2 + $0x8] sm:$0xf] }
 0x2ba   : > { %v613_v53 = vld [vmem:[#allocation2 + $0x8] sm:$0xf]  ;;  %640 = vrot.lane.b32.xlu0 %v632_v52, %s1155_s14  ;;  %v631_v54 = vld [vmem:[#allocation2] sm:$0xff] }
 0x2bb   : > { %621 = vrot.lane.b32.xlu1 %v613_v53, %s1157_s25  ;;  %v635_v55 = vcombine.high %v631_v54, %v631_v54  ;;  %v590_v56 = vsel %vm1330_vm6, %v631_v54, 0.0  ;;  %v699_v57 = vld [vmem:[#allocation2 + $0x8] sm:$0xf]  ;;  %v598_v62 = vcombine.low %v631_v54, %v631_v54 }
 0x2bc   : > { %v674_v58 = vld [vmem:[#allocation2 + $0x8] sm:$0xf]  ;;  %592 = vst [vmem:[#allocation3] sm:$0xf] %v590_v56 }
 0x2bd   : > { %v591_v59 = vsel %vm1338_vm7, %v635_v55, 0.0  ;;  %v657_v5 = vld [vmem:[#allocation2 + $0x8] sm:$0xf] }
 0x2be   : > { %707 = vrot.lane.b32.xlu0 %v699_v57, %s1154_s29  ;;  %593 = vst [vmem:[#allocation3 + $0x8] sm:$0xf] %v591_v59  ;;  %v1051_v60 = vld [vmem:[#allocation2 + $0x8] ss:$0 sps:$4 sm:$0xff]  }
 0x2bf   : > { %682 = vrot.lane.b32.xlu1 %v674_v58, %s1158_s26  ;;  %v1052_v61 = vld [vmem:[#allocation2 + $0x8] ss:$0 sps:$4 sm:$0xff]  }
 0x2c0   : > { %v736_v63 = vld [vmem:[#allocation2 + $0x8] sm:$0xf] }
 0x2c2   : > { %665 = vrot.lane.b32.xlu0 %v657_v5, %s1156_s16 }
 0x2c3   : > { %636 = vrot.lane.b32.xlu1 %v631_v54, %s1155_s14 }
 0x2c6   : > { %602 = vrot.lane.b32.xlu0 %v631_v54, %s1159_s28 }
 0x2c7   : > { %703 = vrot.lane.b32.xlu1 %v631_v54, %s1154_s29 }
 0x2ca   : > { %617 = vrot.lane.b32.xlu0 %v631_v54, %s1157_s25 }
 0x2cb   : > { %604 = vrot.lane.b32.xlu1 %v1051_v60, %s1159_s28 }
 0x2ce   : > { %678 = vrot.lane.b32.xlu0 %v631_v54, %s1158_s26 }
 0x2cf   : > { %727 = vrot.lane.b32.xlu1 %v1052_v61, %s1160_s8 }
 0x2d2   : > { %725 = vrot.lane.b32.xlu0 %v631_v54, %s1160_s8 }
 0x2d3   : > { %638 = vrot.lane.b32.xlu1 %v635_v55, %s1155_s14 }
 0x2d6   : > { %619 = vrot.lane.b32.xlu0 %v635_v55, %s1157_s25  ;;  %s240_s25 = scalar_lea.vmem [#allocation7], %s954_s17 }
 0x2d7   : > { %600 = vrot.lane.b32.xlu1 %v598_v62, %s1159_s28 }
 0x2da   : > { %680 = vrot.lane.b32.xlu0 %v635_v55, %s1158_s26  ;;  %s877_s26 = sshll.u32 %s240_s25, 4  ;;  %s1521_s26 = int_to_ptr.vmem [resolvable:$true] %s877_s26 }
 0x2db   : > { %705 = vrot.lane.b32.xlu1 %v635_v55, %s1154_s29  ;;  %s1083_s10 = scalar_lea.vmem %s1521_s26, 128 }
 0x2dc   : > { %p1084_p6 = scmp.ne.s32.totalorder %s1521_s26, %s1083_s10 }
 0x2de   : > { %661 = vrot.lane.b32.xlu0 %v631_v54, %s1156_s16  ;;  %p1085_p12 = pnand %p1084_p6, %p1590_p11 }
 0x2df   : > { %663 = vrot.lane.b32.xlu1 %v635_v55, %s1156_s16  ;;  %s968_s16 = sshll.u32 %s1215_s22, 7  ;;  %s1163_s22 = smov [#allocation7]  }
 0x2e0   : > { %p1086_p13 = pneg %p1085_p12  ;;  %s1087_s17 = sshll.u32 %s1163_s22, 4  ;;  %s1088_s17 = int_to_ptr.vmem [resolvable:$false] %s1087_s17 }
 0x2e1   : > { %s1089_s11 = scalar_lea.vmem %s1088_s17, 256  ;;  %p1090_p7 = scmp.lt.s32.totalorder %s1521_s26, %s1088_s17 }
 0x2e2   : > { %742 = vrot.lane.b32.xlu0 %v635_v55, %s1161_s7  ;;  %p1091_p10 = scmp.lt.s32.totalorder %s1089_s11, %s1083_s10 }
 0x2e3   : > { %723 = vrot.lane.b32.xlu1 %v598_v62, %s1160_s8 }
 0x2e4   : > { %p1092_p2 = por %p1091_p10, %p1090_p7 }
 0x2e6   : > { %740 = vrot.lane.b32.xlu0 %v631_v54, %s1161_s7  ;;  %p1093_p4 = pnand %p1092_p2, %p1086_p13 }
 0x2e7   : > { %744 = vrot.lane.b32.xlu1 %v736_v63, %s1161_s7  ;;  %s1519_s7 = scalar_lea.hbm %s1568_s5, %s968_s16 }
 0x2eb   : > { %768 = vperm.xlu1 %1042, %v765_v0  }
 0x32c   : > { %v641_v2 = vpop.permute.xlu0 %640 }
 0x32d   : > { %v622_v3 = vpop.permute.xlu1 %621 }
 0x330   : > { %v708_v4 = vpop.permute.xlu0 %707 }
 0x331   : > { %v683_v6 = vpop.permute.xlu1 %682 }
 0x334   : > { %v666_v7 = vpop.permute.xlu0 %665 }
 0x335   : > { %v637_v8 = vpop.permute.xlu1 %636 }
 0x338   : > { %v603_v10 = vpop.permute.xlu0 %602 }
 0x339   : > { %v704_v9 = vpop.permute.xlu1 %703 }
 0x33c   : > { %v618_v12 = vpop.permute.xlu0 %617 }
 0x33d   : > { %v605_v11 = vpop.permute.xlu1 %604 }
 0x33e   : > { %v607_v14 = vsel %vm314_vm8, %v603_v10, %v605_v11 }
 0x33f   : > { %611 = vst [vmem:[#allocation3 + $0x8] sm:$0xf0] %v607_v14 }
 0x340   : > { %v679_v17 = vpop.permute.xlu0 %678 }
 0x341   : > { %v728_v16 = vpop.permute.xlu1 %727 }
 0x344   : > { %v726_v19 = vpop.permute.xlu0 %725 }
 0x345   : > { %v639_v18 = vpop.permute.xlu1 %638  ;;  %v730_v22 = vsel %vm447_vm9, %v726_v19, %v728_v16 }
 0x346   : > { %v642_v20 = vsel %vm356_vm10, %v637_v8, %v639_v18  ;;  %v643_v21 = vsel %vm356_vm10, %v639_v18, %v641_v2  ;;  %734 = vst [vmem:[#allocation3 + $0x38] sm:$0xf0] %v730_v22  ;;  %v756_v13 = vld [vmem:[#allocation3 + $0x8] sm:$0xff] }
 0x347   : > { %v646_v23 = vsel %vm1330_vm6, %v642_v20, 0.0  ;;  %v647_v24 = vsel %vm1338_vm7, %v643_v21, 0.0 }
 0x348   : > { %v650_v25 = vrot.slane %v646_v23, 4  ;;  %v651_v26 = vrot.slane %v647_v24, 4  ;;  %v620_v27 = vpop.permute.xlu0 %619 }
 0x349   : > { %v601_v28 = vpop.permute.xlu1 %600  ;;  %v623_v29 = vsel %vm336_vm11, %v618_v12, %v620_v27  ;;  %v624_v30 = vsel %vm336_vm11, %v620_v27, %v622_v3 }
 0x34a   : > { %654 = vst [vmem:[#allocation3 + $0x10] sm:$0xf0] %v650_v25  ;;  %655 = vst [vmem:[#allocation3 + $0x18] sm:$0xf0] %v651_v26  ;;  %v606_v31 = vsel %vm314_vm8, %v601_v28, %v603_v10  ;;  %v627_v32 = vsel %vm1386_vm12, %v623_v29, 0.0  ;;  %v628_v33 = vsel %vm1392_vm13, %v624_v30, 0.0 }
 0x34b   : > { %610 = vst [vmem:[#allocation3] sm:$0xf0] %v606_v31  ;;  %629 = vst [vmem:[#allocation3 + $0x10] sm:$0xf] %v627_v32 }
 0x34c   : > { %630 = vst [vmem:[#allocation3 + $0x18] sm:$0xf] %v628_v33  ;;  %v681_v34 = vpop.permute.xlu0 %680 }
 0x34d   : > { %v706_v35 = vpop.permute.xlu1 %705  ;;  %v684_v36 = vsel %vm400_vm14, %v679_v17, %v681_v34  ;;  %v685_v37 = vsel %vm400_vm14, %v681_v34, %v683_v6 }
 0x34e   : > { %v709_v38 = vsel %vm426_vm15, %v704_v9, %v706_v35  ;;  %v710_v39 = vsel %vm426_vm15, %v706_v35, %v708_v4  ;;  %v688_v40 = vsel %vm1386_vm12, %v684_v36, 0.0  ;;  %v689_v41 = vsel %vm1392_vm13, %v685_v37, 0.0 }
 0x34f   : > { %v713_v42 = vsel %vm1330_vm6, %v709_v38, 0.0  ;;  %v714_v43 = vsel %vm1338_vm7, %v710_v39, 0.0  ;;  %v692_v44 = vrot.slane %v688_v40, 4  ;;  %v693_v45 = vrot.slane %v689_v41, 4 }
 0x350   : > { %715 = vst [vmem:[#allocation3 + $0x30] sm:$0xf] %v713_v42  ;;  %716 = vst [vmem:[#allocation3 + $0x38] sm:$0xf] %v714_v43  ;;  %v662_v46 = vpop.permute.xlu0 %661 }
 0x351   : > { %v664_v47 = vpop.permute.xlu1 %663  ;;  %696 = vst [vmem:[#allocation3 + $0x20] sm:$0xf0] %v692_v44  ;;  %697 = vst [vmem:[#allocation3 + $0x28] sm:$0xf0] %v693_v45 }
 0x352   : > { %v667_v48 = vsel %vm382_vm0, %v662_v46, %v664_v47  ;;  %v668_v49 = vsel %vm382_vm0, %v664_v47, %v666_v7  ;;  %v755_v52 = vld [vmem:[#allocation3] sm:$0xff]  ;;  %v757_v54 = vld [vmem:[#allocation3 + $0x10] sm:$0xff] }
 0x353   : > { %671 = vst [vmem:[#allocation3 + $0x20] sm:$0xf] %v667_v48  ;;  %672 = vst [vmem:[#allocation3 + $0x28] sm:$0xf] %v668_v49  ;;  %v758_v53 = vld [vmem:[#allocation3 + $0x18] sm:$0xff]  ;;  %v979_v55 = vpack.c.bf16 %v757_v54, %v755_v52 }
 0x354   : > { %v977_v15 = vpack.c.bf16 %v758_v53, %v756_v13  ;;  %v743_v56 = vpop.permute.xlu0 %742 }
 0x355   : > { %v724_v57 = vpop.permute.xlu1 %723 }
 0x356   : > { %v729_v58 = vsel %vm447_vm9, %v724_v57, %v726_v19  ;;  %978 = vmatprep.subr.bf16.mxu1 %v977_v15 }
 0x357   : > { %733 = vst [vmem:[#allocation3 + $0x30] sm:$0xf0] %v729_v58  ;;  %980 = vmatpush1.bf16.msra.mxu1 %v979_v55  ;;  %v762_v63 = vld [vmem:[#allocation3 + $0x38] sm:$0xff] }
 0x358   : > { %v741_v59 = vpop.permute.xlu0 %740 }
 0x359   : > { %v745_v5 = vpop.permute.xlu1 %744  ;;  %v746_v60 = vsel %vm1588_vm3, %v741_v59, %v743_v56 }
 0x35a   : > { %v747_v61 = vsel %vm1589_vm4, %v743_v56, %v745_v5  ;;  %v760_v62 = vld [vmem:[#allocation3 + $0x28] sm:$0xff]  ;;  %v750_v0 = vsel %vm1386_vm12, %v746_v60, 0.0  ;;  %v759_v4 = vld [vmem:[#allocation3 + $0x20] sm:$0xff] }
 0x35b   : > { %v751_v2 = vsel %vm1392_vm13, %v747_v61, 0.0  ;;  %v981_v3 = vpack.c.bf16 %v762_v63, %v760_v62  ;;  %752 = vst [vmem:[#allocation3 + $0x40] sm:$0xf] %v750_v0 }
 0x35c   : > { %753 = vst [vmem:[#allocation3 + $0x48] sm:$0xf] %v751_v2 }
 0x35d   : > { %982 = vmatprep.subr.bf16.mxu1 %v981_v3 }
 0x35e   : > { %v761_v6 = vld [vmem:[#allocation3 + $0x30] sm:$0xff] }
 0x35f   : > { %v983_v7 = vpack.c.bf16 %v761_v6, %v759_v4 }
 0x361   : > { %984 = vmatpush1.bf16.msra.mxu1 %v983_v7 }
 0x362   : > { %v763_v9 = vld [vmem:[#allocation3 + $0x40] sm:$0xf] }
 0x363   : > { %v764_v8 = vld [vmem:[#allocation3 + $0x48] sm:$0xf] }
 0x364   : > { %959 = vmatprep.subr.msk.mxu1 %vm495_vm2, %v764_v8 }
 0x365   : > { %960 = vmatpush1.msk.msra.mxu1 %vm495_vm2, %v763_v9 }
 0x366   : > { %961 = vmatmul.mubr.msk.f32.vlgmr.msra.gmra.mrb[0].mxu1 %vm491_vm1, %v754_v50 }
 0x36a   : > { %v769_v10 = vpop.permute.xlu1 %768 }
 0x439   : > { %v846_v11 = vpop.f32.mrb[0].mxu1 }
 0x43a   : > { %v847_v12 = vadd.f32 %v846_v11, %v769_v10  ;;  %v848_v14 = vpop.f32.mrb[1].mxu1 }
 0x43b   : > { %v849_v16 = vadd.f32 %v848_v14, %v769_v10 }
 0x43c   : > { %v853_v17 = vadd.f32 %v847_v12, %v1309_v1 }
 0x43d   : > { %v854_v18 = vadd.f32 %v851_v51, %v849_v16 }
 0x43e   : > { %v855_v19 = vmax.f32 %v853_v17, 0.0 }
 0x43f   : > { %v856_v20 = vmax.f32 %v854_v18, 0.0 }
 0x441   : > { %v859_v21 = vcombine.low %v855_v19, %v856_v20 }
 0x443   : > { %861 = vst [vmem:[%s240_s25] sm:$0xff] %v859_v21 }
 0x444   : > { %1096 = shalt.err (!%p1093_p4)
}
 0x445   : > { %s1097_s13 = scalar_lea.hbm %s1519_s7, 128  ;;  %s1101_s12 = scalar_lea.hbm %s1568_s5, 256 }
 0x446   : > { %p1098_p5 = scmp.ne.s32.totalorder %s1519_s7, %s1097_s13  ;;  %p1102_p0 = scmp.lt.u32.totalorder %s1519_s7, %s1568_s5 }
 0x447   : > { %p1103_p1 = scmp.lt.u32.totalorder %s1101_s12, %s1097_s13  ;;  %p1105_p6 = scmp.lt.u32.totalorder %s1097_s13, %s1519_s7 }
 0x448   : > { %p1099_p8 = pnand %p1098_p5, %p1590_p11 }
 0x449   : > { %p1104_p3 = por %p1103_p1, %p1102_p0 }
 0x44a   : > { %p1100_p9 = pneg %p1099_p8 }
 0x44b   : > { %p1106_p12 = por %p1105_p6, %p1104_p3 }
 0x44d   : > { %p1107_p13 = pnand %p1106_p12, %p1100_p9 }
 0x44f   : > { %1110 = shalt.err (!%p1107_p13)
}
 0x450   : > { %987 = dma.vmem_to_hbm [thread:$0]  (%p1590_p11), %s1521_s26, 128, %s1519_s7, %s863_s9  }
 0x451 PF: > { %s889_s16 = sand.u32 1, %s1137_s18   ;;  %p1591_p7 = scmp.ne.s32.totalorder %s1574_s6, 0 }
 0x452   : > { %p1592_p10 = scmp.ge.s32.totalorder %s1149_s21, 2  ;;  %s890_s25 = scalar_lea.sflag [#allocation6], %s889_s16 }
 0x454   : > { %p994_p2 = pnand %p1592_p10, %p1591_p7 }
 0x456   : > { %1132 = dma.done.wait (!%p994_p2), %s890_s25, 128  }
 0x457   : > { %1134 = vsyncadd (!%p994_p2), %s890_s25, 4294967168  ;;  %p18_p4 = scmp.ge.s32.totalorder %s1219_s24, 4   ;;  %s1593_s18 = smov %s1141_s19 }
 0x458   : > { %s1594_s19 = smov %s1145_s20  ;;  %s1595_s20 = smov %s1231_s27 }
 0x459   : > { %s1596_s21 = smov %s1219_s24  ;;  %20 = sbr.rel (!%p18_p4) target bundleno = 5 (0x5), region = 85 }
 0x460   :  { %895 = vsyncpa [#allocation5], 1 }
 0x461   :  { %897 = vsyncpa [#allocation5 + $0x1], 1 }
 0x462   :  { %898 = vsyncpa [#allocation6], 1 }
 0x463   :  { %900 = vsyncpa [#allocation6 + $0x1], 1 }

</bundles_post_ra>
